<compile_context>
chip_gen: v7x
topology: tpu7x:2x2x1
jax: 0.10.0
libtpu: 0.0.40
codegen_flags: <defaults>
</compile_context>

<pallas_src>
import functools

import jax
import jax.numpy as jnp
from jax.experimental import pallas as pl
from jax.experimental.pallas import tpu as pltpu

LANES = 128
MAX_TILE_ROWS = 8192      # 8192*128*4B = 4 MiB per f32 input block
ACC_ROWS = 8              # each running sum is held as one (8, 128) f32 vreg
SMALL_N_FAST_PATH = 1 << 20   # below this, pure-JAX reduction is faster


def _round_up(x, m):
    return ((x + m - 1) // m) * m


def _iou_partial_kernel(x_ref, t_ref, o_ref, *, n, tile_rows, tiles_per_shard):
    s = pl.program_id(0)      # shard (parallel; megacore split on v7x)
    t = pl.program_id(1)      # tile within shard (reduction axis)

    @pl.when(t == 0)
    def _init():
        o_ref[...] = jnp.zeros_like(o_ref)

    # Static (Python int) row-level bounds of the valid data.
    n_full_rows = n // LANES                       # rows that are fully valid
    n_rem = n % LANES                              # valid lanes in boundary row
    total_valid_rows = n_full_rows + (1 if n_rem else 0)

    # UNCLAMPED tile id: overhang (duplicated) tiles of the last shard fall
    # outside [0, num_tiles) and are skipped below.
    tile_id = s * tiles_per_shard + t
    tile_row_start = tile_id * tile_rows           # int32 scalar, row units
    is_full = tile_row_start + tile_rows <= n_full_rows
    in_range = tile_row_start < total_valid_rows

    def _accumulate(sig, tgt):
        # Fold the (tile_rows, 128) tile into (8, 128) with vreg-wise adds.
        inter = (sig * tgt).reshape(-1, ACC_ROWS, LANES).sum(axis=0)
        total = (sig + tgt).reshape(-1, ACC_ROWS, LANES).sum(axis=0)
        o_ref[0, 0] += inter      # running intersection (vector)
        o_ref[0, 1] += total      # running total        (vector)

    # Interior tiles: everything in-bounds, no mask work at all.
    @pl.when(is_full)
    def _interior():
        sig = jax.nn.sigmoid(x_ref[...].astype(jnp.float32))
        tgt = t_ref[...].astype(jnp.float32)
        _accumulate(sig, tgt)

    # Boundary tile(s): straddle n (or read Pallas-padded garbage rows past
    # the array end); mask per element.  Overhang tiles skip both branches.
    @pl.when(jnp.logical_and(in_range, jnp.logical_not(is_full)))
    def _boundary():
        row = jax.lax.broadcasted_iota(jnp.int32, (tile_rows, LANES), 0)
        lane = jax.lax.broadcasted_iota(jnp.int32, (tile_rows, LANES), 1)
        grow = tile_row_start + row                # global row index (int32)
        mask = jnp.logical_or(
            grow < n_full_rows,
            jnp.logical_and(grow == n_full_rows, lane < n_rem))
        sig = jnp.where(mask, jax.nn.sigmoid(x_ref[...].astype(jnp.float32)), 0.0)
        tgt = jnp.where(mask, t_ref[...].astype(jnp.float32), 0.0)
        _accumulate(sig, tgt)


def _reference(inputs, targets, smooth=1.0):
    s = jax.nn.sigmoid(inputs.astype(jnp.float32))
    t = targets.astype(jnp.float32)
    intersection = jnp.sum(s * t)
    total = jnp.sum(s + t)
    union = total - intersection
    return (intersection + smooth) / (union + smooth)


def iou_binary(inputs, targets, smooth=1.0, *,
               min_pallas_elems=SMALL_N_FAST_PATH,
               max_tile_rows=MAX_TILE_ROWS):
    """Pallas implementation of IoU_binary.forward. Returns a scalar f32."""
    assert inputs.shape == targets.shape

    x = inputs.reshape(-1)    # free reshape; keep native dtype for DMA
    t = targets.reshape(-1)
    n = x.shape[0]

    # Fast path: for tiny inputs the fused XLA reduction beats kernel launch
    # + pipeline warmup (and avoids the block-larger-than-array case).
    if n < min_pallas_elems:
        return _reference(inputs, targets, smooth)

    # Only pad when the flat length is not lane-aligned.  Pad values are
    # irrelevant: the boundary tile masks by the true element count n.
    rem = n % LANES
    if rem:
        x = jnp.pad(x, (0, LANES - rem))
        t = jnp.pad(t, (0, LANES - rem))

    rows = x.shape[0] // LANES
    x2 = x.reshape(rows, LANES)
    t2 = t.reshape(rows, LANES)

    # Big blocks; multiple of 32 sublanes so bf16/int8 native tiling is legal.
    tile_rows = min(_round_up(max_tile_rows, 32), _round_up(rows, 32))
    num_tiles = pl.cdiv(rows, tile_rows)

    # Split the reduction across both TensorCores (v7x) only when each shard
    # keeps enough tiles to pipeline; otherwise single shard, clamp-free map.
    num_shards = 2 if num_tiles >= 4 else 1
    tiles_per_shard = pl.cdiv(num_tiles, num_shards)

    if num_shards == 1:
        def in_map(s, ti):
            return (ti, 0)
    else:
        def in_map(s, ti):
            # Clamp so the overhanging tiles of the last shard stay in bounds;
            # the kernel skips their compute entirely (in_range predicate).
            return (jnp.minimum(s * tiles_per_shard + ti, num_tiles - 1), 0)

    partials = pl.pallas_call(
        functools.partial(_iou_partial_kernel, n=n, tile_rows=tile_rows,
                          tiles_per_shard=tiles_per_shard),
        out_shape=jax.ShapeDtypeStruct(
            (num_shards, 2, ACC_ROWS, LANES), jnp.float32),
        grid_spec=pltpu.PrefetchScalarGridSpec(
            num_scalar_prefetch=0,
            grid=(num_shards, tiles_per_shard),
            in_specs=[
                pl.BlockSpec((tile_rows, LANES), in_map),
                pl.BlockSpec((tile_rows, LANES), in_map),
            ],
            out_specs=pl.BlockSpec((1, 2, ACC_ROWS, LANES),
                                   lambda s, ti: (s, 0, 0, 0)),
        ),
        compiler_params=pltpu.CompilerParams(
            dimension_semantics=("parallel", "arbitrary"),
            # 2 inputs x 2 buffers x 4 MiB (f32) = 16 MiB of pipelined input;
            # 40 MiB leaves headroom and fits v7x's 64 MiB physical VMEM.
            vmem_limit_bytes=40 << 20),
    )(x2, t2)

    # Tiny final combine (few KiB) done in plain JAX.
    intersection = partials[:, 0].sum()
    total = partials[:, 1].sum()
    union = total - intersection
    return (intersection + smooth) / (union + smooth)


if __name__ == "__main__":
    key = jax.random.PRNGKey(0)
    k1, k2, k3, k4 = jax.random.split(key, 4)

    # --- Test 1: small NCHW shape, forced through the Pallas kernel
    # (single boundary tile; exercises the masked path). ---
    B, C, H, W = 2, 4, 16, 16
    logits = jax.random.normal(k1, (B, C, H, W), dtype=jnp.float32)
    targets = (jax.random.uniform(k2, (B, C, H, W)) > 0.5).astype(jnp.float32)

    iou = iou_binary(logits, targets, smooth=1.0, min_pallas_elems=0)
    jax.block_until_ready(iou)
    ref = _reference(logits, targets, smooth=1.0)
    assert jnp.allclose(iou, ref, rtol=1e-5, atol=1e-6), (iou, ref)

    # --- Test 2: non-lane-aligned shape with a small tile cap so the grid
    # has interior tiles, one boundary tile, 2 shards and an overhang tile. ---
    logits2 = jax.random.normal(k3, (1, 3, 85, 80), dtype=jnp.float32)
    targets2 = (jax.random.uniform(k4, (1, 3, 85, 80)) > 0.5).astype(jnp.float32)

    iou2 = iou_binary(logits2, targets2, smooth=1.0,
                      min_pallas_elems=0, max_tile_rows=32)
    jax.block_until_ready(iou2)
    ref2 = _reference(logits2, targets2, smooth=1.0)
    assert jnp.allclose(iou2, ref2, rtol=1e-5, atol=1e-6), (iou2, ref2)

    # --- Test 3: default wrapper behaviour (small-n fast path). ---
    iou3 = iou_binary(logits, targets, smooth=1.0)
    jax.block_until_ready(iou3)
    assert jnp.allclose(iou3, ref, rtol=1e-5, atol=1e-6), (iou3, ref)

    print("KERNEL_OK")
</pallas_src>

<mosaic_0001>
module attributes {stable_mosaic.version = 11 : i64} {
  func.func @_iou_partial_kernel(%arg0: i32, %arg1: i32, %arg2: memref<32x128xf32, #tpu.memory_space<vmem>>, %arg3: memref<32x128xf32, #tpu.memory_space<vmem>>, %arg4: memref<1x2x8x128xf32, #tpu.memory_space<vmem>>) attributes {dimension_semantics = [#tpu.dimension_semantics<parallel>, #tpu.dimension_semantics<arbitrary>], iteration_bounds = array<i64: 1, 1>, scalar_prefetch = 0 : i64, scratch_operands = 0 : i64, tpu.core_type = #tpu.core_type<tc>, window_params = [{transform_indices = @transform_0, window_bounds = array<i64: 32, 128>}, {transform_indices = @transform_1, window_bounds = array<i64: 32, 128>}, {transform_indices = @transform_2, window_bounds = array<i64: 1, 2, 8, 128>}]} {
    %c0_i32 = arith.constant 0 : i32
    %0 = arith.cmpi eq, %arg1, %c0_i32 : i32
    %1 = arith.extui %0 : i1 to i32
    %c0_i32_0 = arith.constant 0 : i32
    %2 = arith.cmpi ne, %1, %c0_i32_0 : i32
    scf.if %2 {
      %cst = arith.constant 0.000000e+00 : f32
      %15 = vector.broadcast %cst : f32 to vector<1x2x8x128xf32>
      %c0 = arith.constant 0 : index
      %c0_5 = arith.constant 0 : index
      %c0_6 = arith.constant 0 : index
      %c0_7 = arith.constant 0 : index
      %16 = vector.load %arg4[%c0, %c0_5, %c0_6, %c0_7] : memref<1x2x8x128xf32, #tpu.memory_space<vmem>>, vector<1x2x8x128xf32>
      tpu.vector_store %arg4[%c0, %c0_5, %c0_6, %c0_7], %15 {strides = array<i32>} : memref<1x2x8x128xf32, #tpu.memory_space<vmem>>, vector<1x2x8x128xf32>,
    } else {
    }
    %c1_i32 = arith.constant 1 : i32
    %3 = arith.muli %arg0, %c1_i32 : i32
    %4 = arith.addi %3, %arg1 : i32
    %c32_i32 = arith.constant 32 : i32
    %5 = arith.muli %4, %c32_i32 : i32
    %c32_i32_1 = arith.constant 32 : i32
    %6 = arith.addi %5, %c32_i32_1 : i32
    %c16_i32 = arith.constant 16 : i32
    %7 = arith.cmpi sle, %6, %c16_i32 : i32
    %c16_i32_2 = arith.constant 16 : i32
    %8 = arith.cmpi slt, %5, %c16_i32_2 : i32
    %9 = arith.extui %7 : i1 to i32
    %c0_i32_3 = arith.constant 0 : i32
    %10 = arith.cmpi ne, %9, %c0_i32_3 : i32
    scf.if %10 {
      %c0 = arith.constant 0 : index
      %c0_5 = arith.constant 0 : index
      %15 = vector.load %arg2[%c0, %c0_5] : memref<32x128xf32, #tpu.memory_space<vmem>>, vector<32x128xf32>
      %16 = arith.negf %15 : vector<32x128xf32>
      %17 = math.exp %16 : vector<32x128xf32>
      %cst = arith.constant 1.000000e+00 : f32
      %18 = vector.broadcast %cst : f32 to vector<32x128xf32>
      %19 = arith.addf %18, %17 : vector<32x128xf32>
      %20 = arith.divf %18, %19 : vector<32x128xf32>
      %c0_6 = arith.constant 0 : index
      %c0_7 = arith.constant 0 : index
      %21 = vector.load %arg3[%c0_6, %c0_7] : memref<32x128xf32, #tpu.memory_space<vmem>>, vector<32x128xf32>
      %22 = arith.mulf %20, %21 : vector<32x128xf32>
      %23 = vector.shape_cast %22 : vector<32x128xf32> to vector<4x8x128xf32>
      %cst_8 = arith.constant dense<0.000000e+00> : vector<8x128xf32>
      %24 = vector.multi_reduction <add>, %23, %cst_8 [0] : vector<4x8x128xf32> to vector<8x128xf32>
      %25 = arith.addf %20, %21 : vector<32x128xf32>
      %26 = vector.shape_cast %25 : vector<32x128xf32> to vector<4x8x128xf32>
      %cst_9 = arith.constant dense<0.000000e+00> : vector<8x128xf32>
      %27 = vector.multi_reduction <add>, %26, %cst_9 [0] : vector<4x8x128xf32> to vector<8x128xf32>
      %c0_10 = arith.constant 0 : index
      %c0_11 = arith.constant 0 : index
      %c0_12 = arith.constant 0 : index
      %c0_13 = arith.constant 0 : index
      %28 = vector.load %arg4[%c0_10, %c0_11, %c0_12, %c0_13] : memref<1x2x8x128xf32, #tpu.memory_space<vmem>>, vector<1x1x8x128xf32>
      %29 = vector.shape_cast %28 : vector<1x1x8x128xf32> to vector<8x128xf32>
      %30 = arith.addf %29, %24 : vector<8x128xf32>
      %c0_14 = arith.constant 0 : index
      %c0_15 = arith.constant 0 : index
      %c0_16 = arith.constant 0 : index
      %c0_17 = arith.constant 0 : index
      %31 = vector.load %arg4[%c0_14, %c0_15, %c0_16, %c0_17] : memref<1x2x8x128xf32, #tpu.memory_space<vmem>>, vector<1x1x8x128xf32>
      %32 = vector.shape_cast %31 : vector<1x1x8x128xf32> to vector<8x128xf32>
      %33 = vector.shape_cast %30 : vector<8x128xf32> to vector<1x1x8x128xf32>
      tpu.vector_store %arg4[%c0_14, %c0_15, %c0_16, %c0_17], %33 {strides = array<i32>} : memref<1x2x8x128xf32, #tpu.memory_space<vmem>>, vector<1x1x8x128xf32>,
      %c0_18 = arith.constant 0 : index
      %c1 = arith.constant 1 : index
      %c0_19 = arith.constant 0 : index
      %c0_20 = arith.constant 0 : index
      %34 = vector.load %arg4[%c0_18, %c1, %c0_19, %c0_20] : memref<1x2x8x128xf32, #tpu.memory_space<vmem>>, vector<1x1x8x128xf32>
      %35 = vector.shape_cast %34 : vector<1x1x8x128xf32> to vector<8x128xf32>
      %36 = arith.addf %35, %27 : vector<8x128xf32>
      %c0_21 = arith.constant 0 : index
      %c1_22 = arith.constant 1 : index
      %c0_23 = arith.constant 0 : index
      %c0_24 = arith.constant 0 : index
      %37 = vector.load %arg4[%c0_21, %c1_22, %c0_23, %c0_24] : memref<1x2x8x128xf32, #tpu.memory_space<vmem>>, vector<1x1x8x128xf32>
      %38 = vector.shape_cast %37 : vector<1x1x8x128xf32> to vector<8x128xf32>
      %39 = vector.shape_cast %36 : vector<8x128xf32> to vector<1x1x8x128xf32>
      tpu.vector_store %arg4[%c0_21, %c1_22, %c0_23, %c0_24], %39 {strides = array<i32>} : memref<1x2x8x128xf32, #tpu.memory_space<vmem>>, vector<1x1x8x128xf32>,
    } else {
    }
    %true = arith.constant true
    %11 = arith.xori %7, %true : i1
    %12 = arith.andi %8, %11 : i1
    %13 = arith.extui %12 : i1 to i32
    %c0_i32_4 = arith.constant 0 : i32
    %14 = arith.cmpi ne, %13, %c0_i32_4 : i32
    scf.if %14 {
      %15 = tpu.iota {dimensions = array<i32: 0>} : vector<32x128xi32>
      %16 = tpu.iota {dimensions = array<i32: 1>} : vector<32x128xi32>
      %17 = vector.broadcast %5 : i32 to vector<32x128xi32>
      %18 = arith.addi %17, %15 : vector<32x128xi32>
      %c16_i32_5 = arith.constant 16 : i32
      %19 = vector.broadcast %c16_i32_5 : i32 to vector<32x128xi32>
      %20 = arith.cmpi slt, %18, %19 : vector<32x128xi32>
      %c16_i32_6 = arith.constant 16 : i32
      %21 = vector.broadcast %c16_i32_6 : i32 to vector<32x128xi32>
      %22 = arith.cmpi eq, %18, %21 : vector<32x128xi32>
      %c0_i32_7 = arith.constant 0 : i32
      %23 = vector.broadcast %c0_i32_7 : i32 to vector<32x128xi32>
      %24 = arith.cmpi slt, %16, %23 : vector<32x128xi32>
      %25 = arith.andi %22, %24 : vector<32x128xi1>
      %26 = arith.ori %20, %25 : vector<32x128xi1>
      %c0 = arith.constant 0 : index
      %c0_8 = arith.constant 0 : index
      %27 = vector.load %arg2[%c0, %c0_8] : memref<32x128xf32, #tpu.memory_space<vmem>>, vector<32x128xf32>
      %28 = arith.negf %27 : vector<32x128xf32>
      %29 = math.exp %28 : vector<32x128xf32>
      %cst = arith.constant 1.000000e+00 : f32
      %30 = vector.broadcast %cst : f32 to vector<32x128xf32>
      %31 = arith.addf %30, %29 : vector<32x128xf32>
      %32 = arith.divf %30, %31 : vector<32x128xf32>
      %cst_9 = arith.constant 0.000000e+00 : f32
      %33 = vector.broadcast %cst_9 : f32 to vector<32x128xf32>
      %34 = arith.select %26, %32, %33 : vector<32x128xi1>, vector<32x128xf32>
      %c0_10 = arith.constant 0 : index
      %c0_11 = arith.constant 0 : index
      %35 = vector.load %arg3[%c0_10, %c0_11] : memref<32x128xf32, #tpu.memory_space<vmem>>, vector<32x128xf32>
      %cst_12 = arith.constant 0.000000e+00 : f32
      %36 = vector.broadcast %cst_12 : f32 to vector<32x128xf32>
      %37 = arith.select %26, %35, %36 : vector<32x128xi1>, vector<32x128xf32>
      %38 = arith.mulf %34, %37 : vector<32x128xf32>
      %39 = vector.shape_cast %38 : vector<32x128xf32> to vector<4x8x128xf32>
      %cst_13 = arith.constant dense<0.000000e+00> : vector<8x128xf32>
      %40 = vector.multi_reduction <add>, %39, %cst_13 [0] : vector<4x8x128xf32> to vector<8x128xf32>
      %41 = arith.addf %34, %37 : vector<32x128xf32>
      %42 = vector.shape_cast %41 : vector<32x128xf32> to vector<4x8x128xf32>
      %cst_14 = arith.constant dense<0.000000e+00> : vector<8x128xf32>
      %43 = vector.multi_reduction <add>, %42, %cst_14 [0] : vector<4x8x128xf32> to vector<8x128xf32>
      %c0_15 = arith.constant 0 : index
      %c0_16 = arith.constant 0 : index
      %c0_17 = arith.constant 0 : index
      %c0_18 = arith.constant 0 : index
      %44 = vector.load %arg4[%c0_15, %c0_16, %c0_17, %c0_18] : memref<1x2x8x128xf32, #tpu.memory_space<vmem>>, vector<1x1x8x128xf32>
      %45 = vector.shape_cast %44 : vector<1x1x8x128xf32> to vector<8x128xf32>
      %46 = arith.addf %45, %40 : vector<8x128xf32>
      %c0_19 = arith.constant 0 : index
      %c0_20 = arith.constant 0 : index
      %c0_21 = arith.constant 0 : index
      %c0_22 = arith.constant 0 : index
      %47 = vector.load %arg4[%c0_19, %c0_20, %c0_21, %c0_22] : memref<1x2x8x128xf32, #tpu.memory_space<vmem>>, vector<1x1x8x128xf32>
      %48 = vector.shape_cast %47 : vector<1x1x8x128xf32> to vector<8x128xf32>
      %49 = vector.shape_cast %46 : vector<8x128xf32> to vector<1x1x8x128xf32>
      tpu.vector_store %arg4[%c0_19, %c0_20, %c0_21, %c0_22], %49 {strides = array<i32>} : memref<1x2x8x128xf32, #tpu.memory_space<vmem>>, vector<1x1x8x128xf32>,
      %c0_23 = arith.constant 0 : index
      %c1 = arith.constant 1 : index
      %c0_24 = arith.constant 0 : index
      %c0_25 = arith.constant 0 : index
      %50 = vector.load %arg4[%c0_23, %c1, %c0_24, %c0_25] : memref<1x2x8x128xf32, #tpu.memory_space<vmem>>, vector<1x1x8x128xf32>
      %51 = vector.shape_cast %50 : vector<1x1x8x128xf32> to vector<8x128xf32>
      %52 = arith.addf %51, %43 : vector<8x128xf32>
      %c0_26 = arith.constant 0 : index
      %c1_27 = arith.constant 1 : index
      %c0_28 = arith.constant 0 : index
      %c0_29 = arith.constant 0 : index
      %53 = vector.load %arg4[%c0_26, %c1_27, %c0_28, %c0_29] : memref<1x2x8x128xf32, #tpu.memory_space<vmem>>, vector<1x1x8x128xf32>
      %54 = vector.shape_cast %53 : vector<1x1x8x128xf32> to vector<8x128xf32>
      %55 = vector.shape_cast %52 : vector<8x128xf32> to vector<1x1x8x128xf32>
      tpu.vector_store %arg4[%c0_26, %c1_27, %c0_28, %c0_29], %55 {strides = array<i32>} : memref<1x2x8x128xf32, #tpu.memory_space<vmem>>, vector<1x1x8x128xf32>,
    } else {
    }
    return
  }
  func.func @transform_0(%arg0: i32, %arg1: i32) -> (i32, i32) {
    %c0_i32 = arith.constant 0 : i32
    %c0_i32_0 = arith.constant 0 : i32
    return %arg1, %c0_i32 : i32, i32
  }
  func.func @transform_1(%arg0: i32, %arg1: i32) -> (i32, i32) {
    %c0_i32 = arith.constant 0 : i32
    %c0_i32_0 = arith.constant 0 : i32
    return %arg1, %c0_i32 : i32, i32
  }
  func.func @transform_2(%arg0: i32, %arg1: i32) -> (i32, i32, i32, i32) {
    %c0_i32 = arith.constant 0 : i32
    %c0_i32_0 = arith.constant 0 : i32
    %c0_i32_1 = arith.constant 0 : i32
    %c0_i32_2 = arith.constant 0 : i32
    return %arg0, %c0_i32, %c0_i32_0, %c0_i32_1 : i32, i32, i32, i32
  }
}

</mosaic_0001>

<bundles_post_ra>
// kernel: tpu_custom_call.1
= control target key start
LH: loop header
LB: loop body
LE: loop exit
PB: predicated region body
PF: predicated region fallthrough
CT: control target
= control target key end

     0   :  { %7 = vsyncpa [#allocation3], 0  ;;  %s379_s0 = inlined_call_operand.hbm [shape: f32[16,128], index: 0, kind: input, shape index: {}]   ;;  %s380_s1 = inlined_call_operand.hbm [shape: f32[16,128], index: 1, kind: input, shape index: {}]   ;;  %s381_s2 = inlined_call_operand.hbm [shape: f32[1,2,8,128], index: 2, kind: output, shape index: {}]  }
   0x1   :  { %8 = vsyncpa [#allocation6], 0 }
   0x2   :  { %9 = vsyncpa [#allocation4], 0 }
   0x3   :  { %14 = vsyncadd [#allocation3], 256  ;;  %s314_s9 = smov [#allocation2]   ;;  %s242_s13 = scalar_lea.hbm %s379_s0, 256 }
   0x4   :  { %s15_s10 = sshll.u32 %s314_s9, 4  ;;  %p243_p0 = scmp.ne.s32.totalorder %s379_s0, %s242_s13  ;;  %s16_s10 = int_to_ptr.vmem [resolvable:$true] %s15_s10 }
   0x5   :  { %p246_p1 = scmp.lt.u32.totalorder %s242_s13, %s379_s0 }
   0x7   :  { %p248_p2 = pnand %p246_p1, %p243_p0 }
   0x9   :  { %251 = shalt.err (!%p248_p2)
}
   0xa   :  { %s252_s18 = scalar_lea.vmem %s16_s10, 256  ;;  %s256_s19 = scalar_lea.vmem %s16_s10, 512 }
   0xb   :  { %p253_p3 = scmp.ne.s32.totalorder %s16_s10, %s252_s18  ;;  %p257_p4 = scmp.lt.s32.totalorder %s16_s10, %s16_s10 }
   0xc   :  { %p258_p5 = scmp.lt.s32.totalorder %s256_s19, %s252_s18 }
   0xe   :  { %p259_p6 = por %p258_p5, %p257_p4 }
  0x10   :  { %p260_p7 = pnand %p259_p6, %p253_p3 }
  0x12   :  { %263 = shalt.err (!%p260_p7)
}
  0x13   :  { %s315_s20 = smov 128   ;;  %s316_s21 = smov 8  }
  0x14   :  { %21 = dma.hbm_to_vmem [thread:$0]  %s379_s0, 256, %s16_s10, [#allocation3], %s315_s20, %s315_s20, %s316_s21  }
  0x15   :  { %26 = vsyncadd [#allocation6], 256  ;;  %s317_s24 = smov [#allocation5]   ;;  %s264_s28 = scalar_lea.hbm %s380_s1, 256 }
  0x16   :  { %s27_s25 = sshll.u32 %s317_s24, 4  ;;  %p265_p8 = scmp.ne.s32.totalorder %s380_s1, %s264_s28  ;;  %s28_s25 = int_to_ptr.vmem [resolvable:$true] %s27_s25 }
  0x17   :  { %p268_p9 = scmp.lt.u32.totalorder %s264_s28, %s380_s1 }
  0x19   :  { %p270_p10 = pnand %p268_p9, %p265_p8 }
  0x1b   :  { %273 = shalt.err (!%p270_p10)
}
  0x1c   :  { %s274_s5 = scalar_lea.vmem %s28_s25, 256  ;;  %s278_s0 = scalar_lea.vmem %s28_s25, 512 }
  0x1d   :  { %p275_p11 = scmp.ne.s32.totalorder %s28_s25, %s274_s5  ;;  %p279_p12 = scmp.lt.s32.totalorder %s28_s25, %s28_s25 }
  0x1e   :  { %p280_p13 = scmp.lt.s32.totalorder %s278_s0, %s274_s5 }
  0x20   :  { %p281_p0 = por %p280_p13, %p279_p12 }
  0x22   :  { %p282_p1 = pnand %p281_p0, %p275_p11 }
  0x24   :  { %285 = shalt.err (!%p282_p1)
}
  0x25   :  { %33 = dma.hbm_to_vmem [thread:$0]  %s380_s1, 256, %s28_s25, [#allocation6], %s315_s20, %s315_s20, %s316_s21  }
  0x26   :  { %308 = dma.done.wait [#allocation3], 512  }
  0x27   :  { %309 = vsyncadd [#allocation3], 4294966784 }
  0x28   :  { %310 = dma.done.wait [#allocation6], 512  }
  0x29   :  { %311 = vsyncadd [#allocation6], 4294966784  ;;  %v141_v0 = vld [vmem:[#allocation2] sm:$0xff]  ;;  %v142_v1 = vld [vmem:[#allocation2 + $0x8] sm:$0xff]  ;;  %s318_s1 = smov [#allocation7]  }
  0x2a   :  { %v224_v2 = vmul.f32 -1.442695, %v141_v0  ;;  %v225_v3 = vmul.f32 -1.442695, %v142_v1  ;;  %v173_v8 = vld [vmem:[#allocation5] sm:$0xff]  ;;  %v174_v9 = vld [vmem:[#allocation5 + $0x8] sm:$0xff] }
  0x2b   :  { %s207_s8 = sshll.u32 %s318_s1, 4  ;;  %s208_s8 = int_to_ptr.vmem [resolvable:$true] %s207_s8 }
  0x2c   :  { %234 = vpow2.f32 %v224_v2  ;;  %s286_s9 = scalar_lea.vmem %s208_s8, 256  ;;  %p291_p3 = scmp.lt.s32.totalorder %s208_s8, %s208_s8 }
  0x2d   :  { %236 = vpow2.f32 %v225_v3  ;;  %p287_p2 = scmp.ne.s32.totalorder %s208_s8, %s286_s9  ;;  %p292_p4 = scmp.lt.s32.totalorder %s286_s9, %s286_s9 }
  0x2f   :  { %p293_p5 = por %p292_p4, %p291_p3 }
  0x31   :  { %p294_p6 = pnand %p293_p5, %p287_p2 }
  0x36   :  { %v235_v4 = vpop.eup %234 }
  0x37   :  { %v237_v5 = vpop.eup %236  ;;  %v157_v6 = vadd.f32 1.0, %v235_v4 }
  0x38   :  { %v158_v7 = vadd.f32 1.0, %v237_v5 }
  0x39   :  { %238 = vrcp.f32 %v157_v6 }
  0x3a   :  { %240 = vrcp.f32 %v158_v7 }
  0x43   :  { %v239_v10 = vpop.eup %238 }
  0x44   :  { %v241_v11 = vpop.eup %240  ;;  %v181_v12 = vmul.f32 %v239_v10, %v173_v8  ;;  %v188_v13 = vadd.f32 %v239_v10, %v173_v8 }
  0x45   :  { %v182_v14 = vmul.f32 %v241_v11, %v174_v9  ;;  %v189_v15 = vadd.f32 %v241_v11, %v174_v9 }
  0x47   :  { %v185_v16 = vadd.f32 %v182_v14, %v181_v12  ;;  %v192_v17 = vadd.f32 %v189_v15, %v188_v13 }
  0x49   :  { %197 = vst [vmem:[#allocation7] sm:$0xff] %v185_v16  ;;  %201 = vst [vmem:[#allocation7 + $0x8] sm:$0xff] %v192_v17 }
  0x4a   :  { %297 = shalt.err (!%p294_p6)
}
  0x4b   :  { %s298_s12 = scalar_lea.hbm %s381_s2, 256 }
  0x4c   :  { %p299_p7 = scmp.ne.s32.totalorder %s381_s2, %s298_s12  ;;  %p302_p8 = scmp.lt.u32.totalorder %s298_s12, %s381_s2 }
  0x4e   :  { %p304_p9 = pnand %p302_p8, %p299_p7 }
  0x50   :  { %307 = shalt.err (!%p304_p9)
}
  0x51   :  { %213 = dma.vmem_to_hbm [thread:$0]  %s208_s8, 256, %s381_s2, [#allocation4], %s315_s20, %s315_s20, %s316_s21  }
  0x52   :  { %312 = dma.done.wait [#allocation4], 256  }
  0x53   :  { %313 = vsyncadd [#allocation4], 4294967040 }
  0x54   :  { %217 = vsyncpa [#allocation3], 1 }
  0x55   :  { %218 = vsyncpa [#allocation6], 1 }
  0x56   :  { %219 = vsyncpa [#allocation4], 1 }

</bundles_post_ra>
